<compile_context>
chip_gen: v6e
topology: v6e:2x2x1
jax: 0.10.0
libtpu: 0.0.40
codegen_flags: <defaults>
</compile_context>

<pallas_src>
import jax
import jax.numpy as jnp
from jax import lax
from jax.experimental import pallas as pl
from jax.experimental.pallas import tpu as pltpu

_LANE = 128
_SUBLANE = 8


def _round_up(x, m):
    return (x + m - 1) // m * m


def _logreg_kernel(seq_ref, w_ref, b_ref, out_ref, acc_ref):
    # seq_ref: (tm, tk)        row tile of the input features
    # w_ref:   (c_pad, tk)     PyTorch-layout weight slice (classes, features)
    # b_ref:   (1, c_pad)      f32 bias (class-padded)
    # out_ref: (tm, c_pad)     output tile (resident across the K axis)
    # acc_ref: (tm, c_pad)     f32 accumulator scratch
    k = pl.program_id(1)

    @pl.when(k == 0)
    def _():
        acc_ref[...] = jnp.zeros_like(acc_ref)

    # seq @ W^T on the MXU: contract the last (feature) dim of both operands,
    # avoiding any transposed copy of the weight.
    acc_ref[...] += lax.dot_general(
        seq_ref[...],
        w_ref[...],
        dimension_numbers=(((1,), (1,)), ((), ())),
        preferred_element_type=jnp.float32,
    )

    @pl.when(k == pl.num_programs(1) - 1)
    def _():
        out_ref[...] = (acc_ref[...] + b_ref[...]).astype(out_ref.dtype)


def _choose_tiles(n_pad, ft_in, c_pad, itemsize, vmem_budget=12 << 20):
    """Pick (tm, tk, ft_pad) so the double-buffered pipeline fits a conservative
    VMEM budget that is safe on v5e/v6e (16/32 MiB scoped default) and v7x (32 MiB
    scoped default, 64 MiB physical)."""
    if ft_in <= 2048:
        tk = ft_in                     # single K step, no feature padding
        ft_pad = ft_in
    else:
        tk = 512                       # K-tiled reduction (pattern P3)
        ft_pad = _round_up(ft_in, tk)

    # Bytes: 2x seq tile + 2x weight slice + 2x out tile + 1x f32 accumulator.
    w_bytes = 2 * c_pad * tk * itemsize
    per_row = 2 * tk * itemsize + 2 * c_pad * itemsize + 4 * c_pad
    tm = max((vmem_budget - w_bytes) // per_row, _SUBLANE)
    tm = min(int(tm), 1024, n_pad)
    tm = max(_SUBLANE, (tm // _SUBLANE) * _SUBLANE)
    return int(tm), int(tk), int(ft_pad)


def logreg_forward(seq, weight, bias, *, cast_to_bf16=False):
    """seq: (N, ft_in); weight: (nb_classes, ft_in) [PyTorch layout]; bias: (nb_classes,).

    Set cast_to_bf16=True on v6e/v7x to halve the HBM bytes streamed for seq/weight
    (accumulation stays f32 inside the kernel).
    """
    n, ft_in = seq.shape
    nb_classes = weight.shape[0]
    out_dtype = seq.dtype

    if cast_to_bf16:
        seq = seq.astype(jnp.bfloat16)
        weight = weight.astype(jnp.bfloat16)

    # Lane-dense output: pad classes to a multiple of 128.
    c_pad = _round_up(max(nb_classes, _LANE), _LANE)
    # Rows padded to a sublane multiple so tm can be a multiple of 8.
    n_pad = _round_up(max(n, _SUBLANE), _SUBLANE)

    itemsize = jnp.dtype(seq.dtype).itemsize
    tm, tk, ft_pad = _choose_tiles(n_pad, ft_in, c_pad, itemsize)

    # Zero-pad operands where needed (zeros do not change the matmul result).
    if n_pad != n or ft_pad != ft_in:
        seq_p = jnp.zeros((n_pad, ft_pad), seq.dtype).at[:n, :ft_in].set(seq)
    else:
        seq_p = seq
    w_p = jnp.zeros((c_pad, ft_pad), weight.dtype).at[:nb_classes, :ft_in].set(weight)
    b_p = jnp.zeros((1, c_pad), jnp.float32).at[0, :nb_classes].set(
        bias.astype(jnp.float32))

    grid = (pl.cdiv(n_pad, tm), ft_pad // tk)

    out = pl.pallas_call(
        _logreg_kernel,
        out_shape=jax.ShapeDtypeStruct((n_pad, c_pad), out_dtype),
        grid_spec=pltpu.PrefetchScalarGridSpec(
            num_scalar_prefetch=0,
            grid=grid,
            in_specs=[
                pl.BlockSpec((tm, tk), lambda i, k: (i, k)),       # seq row tile
                pl.BlockSpec((c_pad, tk), lambda i, k: (0, k)),    # weight slice (resident over i)
                pl.BlockSpec((1, c_pad), lambda i, k: (0, 0)),     # bias (resident)
            ],
            out_specs=pl.BlockSpec((tm, c_pad), lambda i, k: (i, 0)),
            scratch_shapes=[pltpu.VMEM((tm, c_pad), jnp.float32)],
        ),
        compiler_params=pltpu.CompilerParams(
            # Row axis parallel (2 TCs on v7x), reduction axis arbitrary.
            dimension_semantics=("parallel", "arbitrary"),
        ),
    )(seq_p, w_p, b_p)

    return out[:n, :nb_classes]


def xavier_uniform(key, shape, dtype=jnp.float32):
    # matches torch.nn.init.xavier_uniform_ for a Linear weight (fan_out, fan_in)
    fan_out, fan_in = shape
    limit = (6.0 / (fan_in + fan_out)) ** 0.5
    return jax.random.uniform(key, shape, dtype=dtype, minval=-limit, maxval=limit)


if __name__ == "__main__":
    key = jax.random.PRNGKey(0)
    k_seq, k_w, k_seq2, k_w2, k_b2 = jax.random.split(key, 5)

    # Small demo shapes consistent with the module.
    N, FT_IN, NB_CLASSES = 8, 32, 8
    seq = jax.random.normal(k_seq, (N, FT_IN), dtype=jnp.float32)
    weight = xavier_uniform(k_w, (NB_CLASSES, FT_IN))   # PyTorch Linear weight layout
    bias = jnp.zeros((NB_CLASSES,), dtype=jnp.float32)  # bias filled with 0.0 per weights_init

    out = logreg_forward(seq, weight, bias)
    jax.block_until_ready(out)
    ref = seq @ weight.T + bias
    assert out.shape == ref.shape
    assert jnp.allclose(out, ref, atol=1e-5, rtol=1e-5), "mismatch vs reference (demo)"

    # Ragged / padded path: N not a multiple of 8, classes not a multiple of 128,
    # nonzero bias — verifies padding + slicing correctness.
    N2, FT2, C2 = 37, 96, 5
    seq2 = jax.random.normal(k_seq2, (N2, FT2), dtype=jnp.float32)
    weight2 = xavier_uniform(k_w2, (C2, FT2))
    bias2 = jax.random.normal(k_b2, (C2,), dtype=jnp.float32)
    out2 = logreg_forward(seq2, weight2, bias2)
    jax.block_until_ready(out2)
    ref2 = seq2 @ weight2.T + bias2
    assert out2.shape == ref2.shape
    assert jnp.allclose(out2, ref2, atol=1e-5, rtol=1e-5), "mismatch vs reference (ragged)"

    print("KERNEL_OK")
</pallas_src>

<mosaic_0001>
module attributes {stable_mosaic.version = 11 : i64} {
  func.func @_logreg_kernel(%arg0: i32, %arg1: i32, %arg2: memref<8x32xf32, #tpu.memory_space<vmem>>, %arg3: memref<128x32xf32, #tpu.memory_space<vmem>>, %arg4: memref<1x128xf32, #tpu.memory_space<vmem>>, %arg5: memref<8x128xf32, #tpu.memory_space<vmem>>, %arg6: memref<8x128xf32, #tpu.memory_space<vmem>>) attributes {dimension_semantics = [#tpu.dimension_semantics<parallel>, #tpu.dimension_semantics<arbitrary>], iteration_bounds = array<i64: 1, 1>, scalar_prefetch = 0 : i64, scratch_operands = 1 : i64, tpu.core_type = #tpu.core_type<tc>, window_params = [{transform_indices = @transform_0, window_bounds = array<i64: 8, 32>}, {transform_indices = @transform_1, window_bounds = array<i64: 128, 32>}, {pipeline_mode = #tpu.pipeline_mode<synchronous>, transform_indices = @transform_2, window_bounds = array<i64: 1, 128>}, {transform_indices = @transform_3, window_bounds = array<i64: 8, 128>}]} {
    %c0_i32 = arith.constant 0 : i32
    %0 = arith.cmpi eq, %arg1, %c0_i32 : i32
    %1 = arith.extui %0 : i1 to i32
    %c0_i32_0 = arith.constant 0 : i32
    %2 = arith.cmpi ne, %1, %c0_i32_0 : i32
    scf.if %2 {
      %cst_10 = arith.constant 0.000000e+00 : f32
      %12 = vector.broadcast %cst_10 : f32 to vector<8x128xf32>
      %c0_11 = arith.constant 0 : index
      %c0_12 = arith.constant 0 : index
      %13 = vector.load %arg6[%c0_11, %c0_12] : memref<8x128xf32, #tpu.memory_space<vmem>>, vector<8x128xf32>
      tpu.vector_store %arg6[%c0_11, %c0_12], %12 {strides = array<i32>} : memref<8x128xf32, #tpu.memory_space<vmem>>, vector<8x128xf32>,
    } else {
    }
    %c0 = arith.constant 0 : index
    %c0_1 = arith.constant 0 : index
    %3 = vector.load %arg6[%c0, %c0_1] : memref<8x128xf32, #tpu.memory_space<vmem>>, vector<8x128xf32>
    %c0_2 = arith.constant 0 : index
    %c0_3 = arith.constant 0 : index
    %4 = vector.load %arg2[%c0_2, %c0_3] : memref<8x32xf32, #tpu.memory_space<vmem>>, vector<8x32xf32>
    %c0_4 = arith.constant 0 : index
    %c0_5 = arith.constant 0 : index
    %5 = vector.load %arg3[%c0_4, %c0_5] : memref<128x32xf32, #tpu.memory_space<vmem>>, vector<128x32xf32>
    %cst = arith.constant dense<0.000000e+00> : vector<8x128xf32>
    %6 = tpu.matmul %4, %5, %cst {dimension_numbers = #tpu.dot_dimension_numbers<[1], [1], [0], [0], [0, 0, 1, 0], [], []>} : vector<8x32xf32>, vector<128x32xf32>, vector<8x128xf32> -> vector<8x128xf32>
    %7 = arith.addf %3, %6 : vector<8x128xf32>
    %c0_6 = arith.constant 0 : index
    %c0_7 = arith.constant 0 : index
    %8 = vector.load %arg6[%c0_6, %c0_7] : memref<8x128xf32, #tpu.memory_space<vmem>>, vector<8x128xf32>
    tpu.vector_store %arg6[%c0_6, %c0_7], %7 {strides = array<i32>} : memref<8x128xf32, #tpu.memory_space<vmem>>, vector<8x128xf32>,
    %c0_i32_8 = arith.constant 0 : i32
    %9 = arith.cmpi eq, %arg1, %c0_i32_8 : i32
    %10 = arith.extui %9 : i1 to i32
    %c0_i32_9 = arith.constant 0 : i32
    %11 = arith.cmpi ne, %10, %c0_i32_9 : i32
    scf.if %11 {
      %c0_10 = arith.constant 0 : index
      %c0_11 = arith.constant 0 : index
      %12 = vector.load %arg6[%c0_10, %c0_11] : memref<8x128xf32, #tpu.memory_space<vmem>>, vector<8x128xf32>
      %c0_12 = arith.constant 0 : index
      %c0_13 = arith.constant 0 : index
      %13 = vector.load %arg4[%c0_12, %c0_13] : memref<1x128xf32, #tpu.memory_space<vmem>>, vector<1x128xf32>
      %14 = vector.broadcast %13 : vector<1x128xf32> to vector<8x128xf32>
      %15 = arith.addf %12, %14 : vector<8x128xf32>
      %c0_14 = arith.constant 0 : index
      %c0_15 = arith.constant 0 : index
      %16 = vector.load %arg5[%c0_14, %c0_15] : memref<8x128xf32, #tpu.memory_space<vmem>>, vector<8x128xf32>
      tpu.vector_store %arg5[%c0_14, %c0_15], %15 {strides = array<i32>} : memref<8x128xf32, #tpu.memory_space<vmem>>, vector<8x128xf32>,
    } else {
    }
    return
  }
  func.func @transform_0(%arg0: i32, %arg1: i32) -> (i32, i32) {
    %c0_i32 = arith.constant 0 : i32
    return %arg0, %arg1 : i32, i32
  }
  func.func @transform_1(%arg0: i32, %arg1: i32) -> (i32, i32) {
    %c0_i32 = arith.constant 0 : i32
    %c0_i32_0 = arith.constant 0 : i32
    return %c0_i32, %arg1 : i32, i32
  }
  func.func @transform_2(%arg0: i32, %arg1: i32) -> (i32, i32) {
    %c0_i32 = arith.constant 0 : i32
    %c0_i32_0 = arith.constant 0 : i32
    %c0_i32_1 = arith.constant 0 : i32
    return %c0_i32, %c0_i32_0 : i32, i32
  }
  func.func @transform_3(%arg0: i32, %arg1: i32) -> (i32, i32) {
    %c0_i32 = arith.constant 0 : i32
    %c0_i32_0 = arith.constant 0 : i32
    return %arg0, %c0_i32 : i32, i32
  }
}

</mosaic_0001>

<bundles_post_ra>
// kernel: tpu_custom_call.1
= control target key start
LH: loop header
LB: loop body
LE: loop exit
PB: predicated region body
PF: predicated region fallthrough
CT: control target
= control target key end

     0   :  { %vm38_vm0 = vcmask 261120   ;;  %v284_v1 = vmov 0.0   ;;  %vm285_vm1 = vmmov 0   ;;  %s381_s0 = inlined_call_operand.vmem [shape: f32[8,32], index: 0, kind: input, shape index: {}]   ;;  %s382_s1 = inlined_call_operand.vmem [shape: f32[128,32], index: 1, kind: input, shape index: {}]   ;;  %s383_s2 = inlined_call_operand.vmem [shape: f32[1,128], index: 2, kind: input, shape index: {}]   ;;  %s384_s3 = inlined_call_operand.hbm [shape: f32[8,128], index: 3, kind: output, shape index: {}]  }
   0x1   :  { %v37_v0 = vld [vmem:[%s382_s1 + $0x78] sm:$0xff]  ;;  %224 = vmatprep.subr.mxu0 %v284_v1  ;;  %256 = vmatprep.mubr.msk.f32.mxu0 %vm285_vm1, %v284_v1  ;;  %v36_v2 = vld [vmem:[%s382_s1 + $0x70] sm:$0xff] }
   0x2   :  { %225 = vmatpush3.xpose.msk.msra.mxu0 %vm38_vm0, %v37_v0 }
   0x3   :  { %226 = vmatprep.subr.mxu0 %v284_v1 }
   0x4   :  { %8 = vsyncpa [#allocation4], 0  ;;  %v35_v3 = vld [vmem:[%s382_s1 + $0x68] sm:$0xff]  ;;  %v34_v4 = vld [vmem:[%s382_s1 + $0x60] sm:$0xff]  ;;  %s286_s21 = smov [#allocation3]  }
   0x5   :  { %v33_v5 = vld [vmem:[%s382_s1 + $0x58] sm:$0xff]  ;;  %v32_v6 = vld [vmem:[%s382_s1 + $0x50] sm:$0xff]  ;;  %v31_v7 = vld [vmem:[%s382_s1 + $0x48] sm:$0xff]  ;;  %s181_s22 = sshll.u32 %s286_s21, 4  ;;  %s182_s22 = int_to_ptr.vmem [resolvable:$true] %s181_s22 }
   0x6   :  { %227 = vmatpush3.xpose.msk.msra.mxu0 %vm38_vm0, %v36_v2  ;;  %v30_v8 = vld [vmem:[%s382_s1 + $0x40] sm:$0xff]  ;;  %v29_v9 = vld [vmem:[%s382_s1 + $0x38] sm:$0xff]  ;;  %v28_v10 = vld [vmem:[%s382_s1 + $0x30] sm:$0xff]  ;;  %p267_p1 = scmp.lt.s32.totalorder %s182_s22, %s182_s22 }
   0x7   :  { %228 = vmatprep.subr.mxu0 %v284_v1  ;;  %v27_v11 = vld [vmem:[%s382_s1 + $0x28] sm:$0xff]  ;;  %v26_v12 = vld [vmem:[%s382_s1 + $0x20] sm:$0xff]  ;;  %v25_v13 = vld [vmem:[%s382_s1 + $0x18] sm:$0xff] }
   0x8   :  { %v24_v14 = vld [vmem:[%s382_s1 + $0x10] sm:$0xff]  ;;  %v23_v15 = vld [vmem:[%s382_s1 + $0x8] sm:$0xff]  ;;  %v22_v16 = vld [vmem:[%s382_s1] sm:$0xff]  ;;  %s262_s1 = scalar_lea.vmem %s182_s22, 128 }
   0x9   :  { %v21_v17 = vld [vmem:[%s381_s0] sm:$0xff]  ;;  %p263_p0 = scmp.ne.s32.totalorder %s182_s22, %s262_s1  ;;  %p268_p2 = scmp.lt.s32.totalorder %s262_s1, %s262_s1 }
   0xa   :  { %229 = vmatpush3.xpose.msk.msra.mxu0 %vm38_vm0, %v35_v3  ;;  %v206_v18 = vld [vmem:[%s383_s2] ss:$0 sm:$0xff] }
   0xb   :  { %230 = vmatprep.subr.mxu0 %v284_v1  ;;  %p269_p3 = por %p268_p2, %p267_p1 }
   0xd   :  { %p270_p4 = pnand %p269_p3, %p263_p0 }
   0xe   :  { %231 = vmatpush3.xpose.msk.msra.mxu0 %vm38_vm0, %v34_v4 }
   0xf   :  { %232 = vmatprep.subr.mxu0 %v284_v1 }
  0x12   :  { %233 = vmatpush3.xpose.msk.msra.mxu0 %vm38_vm0, %v33_v5 }
  0x13   :  { %234 = vmatprep.subr.mxu0 %v284_v1 }
  0x16   :  { %235 = vmatpush3.xpose.msk.msra.mxu0 %vm38_vm0, %v32_v6 }
  0x17   :  { %236 = vmatprep.subr.mxu0 %v284_v1 }
  0x1a   :  { %237 = vmatpush3.xpose.msk.msra.mxu0 %vm38_vm0, %v31_v7 }
  0x1b   :  { %238 = vmatprep.subr.mxu0 %v284_v1 }
  0x1e   :  { %239 = vmatpush3.xpose.msk.msra.mxu0 %vm38_vm0, %v30_v8 }
  0x1f   :  { %240 = vmatprep.subr.mxu0 %v284_v1 }
  0x22   :  { %241 = vmatpush3.xpose.msk.msra.mxu0 %vm38_vm0, %v29_v9 }
  0x23   :  { %242 = vmatprep.subr.mxu0 %v284_v1 }
  0x26   :  { %243 = vmatpush3.xpose.msk.msra.mxu0 %vm38_vm0, %v28_v10 }
  0x27   :  { %244 = vmatprep.subr.mxu0 %v284_v1 }
  0x2a   :  { %245 = vmatpush3.xpose.msk.msra.mxu0 %vm38_vm0, %v27_v11 }
  0x2b   :  { %246 = vmatprep.subr.mxu0 %v284_v1 }
  0x2e   :  { %247 = vmatpush3.xpose.msk.msra.mxu0 %vm38_vm0, %v26_v12 }
  0x2f   :  { %248 = vmatprep.subr.mxu0 %v284_v1 }
  0x32   :  { %249 = vmatpush3.xpose.msk.msra.mxu0 %vm38_vm0, %v25_v13 }
  0x33   :  { %250 = vmatprep.subr.mxu0 %v284_v1 }
  0x36   :  { %251 = vmatpush3.xpose.msk.msra.mxu0 %vm38_vm0, %v24_v14 }
  0x37   :  { %252 = vmatprep.subr.mxu0 %v284_v1 }
  0x3a   :  { %253 = vmatpush3.xpose.msk.msra.mxu0 %vm38_vm0, %v23_v15 }
  0x3b   :  { %254 = vmatprep.subr.mxu0 %v284_v1 }
  0x3e   :  { %255 = vmatpush3.xpose.msk.msra.mxu0 %vm38_vm0, %v22_v16 }
  0x41   :  { %257 = vmatmul.mubr.msk.f32.vlgmr.msra.gmra.mxu0 %vm38_vm0, %v21_v17 }
 0x101   :  { %v156_v19 = vpop.f32.mrf.mxu0 }
 0x102   :  { %v173_v20 = vadd.f32 %v206_v18, %v156_v19 }
 0x103   :  { %v258_v21 = vpop.f32.mrf.mxu0 }
 0x104   :  { %174 = vst [vmem:[#allocation3] sm:$0xff] %v173_v20 }
 0x105   :  { %273 = shalt.err (!%p270_p4)
}
 0x106   :  { %184 = dma.vmem_to_hbm [thread:$0]  %s182_s22, 128, %s384_s3, [#allocation4]  }
 0x107   :  { %282 = dma.done.wait [#allocation4], 128  }
 0x108   :  { %283 = vsyncadd [#allocation4], 4294967168 }
 0x109   :  { %188 = vsyncpa [#allocation4], 1 }

</bundles_post_ra>
